<compile_context>
chip_gen: v7x
topology: tpu7x:2x2x1
jax: 0.10.0
libtpu: 0.0.40
codegen_flags: <defaults>
</compile_context>

<pallas_src>
import jax
import jax.numpy as jnp
from jax.experimental import pallas as pl
from jax.experimental.pallas import tpu as pltpu

HIDDEN = 128
BN_EPS = 1e-5


def _netT_kernel(z_ref, w1_ref, bn_ref, w2_ref, w3_ref, o_ref):
    # z_ref: (B, xn) f32; w*_ref: bf16; bn_ref: (4, HIDDEN) f32 = [g1;b1;g2;b2]
    inv_b = 1.0 / z_ref.shape[0]

    g1 = bn_ref[0:1, :]
    b1 = bn_ref[1:2, :]
    g2 = bn_ref[2:3, :]
    b2 = bn_ref[3:4, :]

    # ---- lin1 : z @ W1 (bf16 operands, f32 MXU accumulation) ---------------
    h = jnp.dot(z_ref[...].astype(jnp.bfloat16), w1_ref[...],
                preferred_element_type=jnp.float32)

    # ---- bn1 (one-pass batch stats, folded scale/shift, clamped var) + ReLU
    mean1 = jnp.sum(h, axis=0, keepdims=True) * inv_b
    ex2_1 = jnp.sum(h * h, axis=0, keepdims=True) * inv_b
    var1 = jnp.maximum(ex2_1 - mean1 * mean1, 0.0)
    scale1 = g1 * jax.lax.rsqrt(var1 + BN_EPS)
    shift1 = b1 - mean1 * scale1
    h = jnp.maximum(h * scale1 + shift1, 0.0)

    # ---- lin2 : h @ W2 ------------------------------------------------------
    h = jnp.dot(h.astype(jnp.bfloat16), w2_ref[...],
                preferred_element_type=jnp.float32)

    # ---- bn2 + ReLU ----------------------------------------------------------
    mean2 = jnp.sum(h, axis=0, keepdims=True) * inv_b
    ex2_2 = jnp.sum(h * h, axis=0, keepdims=True) * inv_b
    var2 = jnp.maximum(ex2_2 - mean2 * mean2, 0.0)
    scale2 = g2 * jax.lax.rsqrt(var2 + BN_EPS)
    shift2 = b2 - mean2 * scale2
    h = jnp.maximum(h * scale2 + shift2, 0.0)

    # ---- lin_out : h @ W3, direct (B, yn) store (no padding / no slice) ----
    o_ref[...] = jnp.dot(h.astype(jnp.bfloat16), w3_ref[...],
                         preferred_element_type=jnp.float32)


def prepare_params(w1, g1, b1, w2, g2, b2, w3):
    """One-time parameter prep: bf16 weights, BN affine params packed (4,128)."""
    bn = jnp.stack([g1.reshape(-1), b1.reshape(-1),
                    g2.reshape(-1), b2.reshape(-1)], axis=0).astype(jnp.float32)
    return (w1.astype(jnp.bfloat16), bn,
            w2.astype(jnp.bfloat16), w3.astype(jnp.bfloat16))


def netT_forward(z, params):
    """z: (B, xn) or (G, B, xn) float32 -> (B, yn) / (G, B, yn) float32.

    Each leading-axis slice is an *independent* BatchNorm batch (stats couple
    rows only within a slice)."""
    w1, bn, w2, w3 = params
    squeeze = z.ndim == 2
    if squeeze:
        z = z[None]
    G, B, xn = z.shape
    yn = w3.shape[1]

    flops = 2 * G * B * (xn * HIDDEN + HIDDEN * HIDDEN + HIDDEN * yn)
    bytes_accessed = (z.size * 4 + (w1.size + w2.size + w3.size) * 2
                      + bn.size * 4 + G * B * yn * 4)

    out = pl.pallas_call(
        _netT_kernel,
        out_shape=jax.ShapeDtypeStruct((G, B, yn), jnp.float32),
        grid_spec=pltpu.PrefetchScalarGridSpec(
            num_scalar_prefetch=0,
            grid=(G,),
            in_specs=[
                # per-step activation tile (double-buffered across the grid)
                pl.BlockSpec((None, B, xn), lambda i: (i, 0, 0)),
                # weights / BN params: constant block index -> stay VMEM-resident
                pl.BlockSpec((xn, HIDDEN), lambda i: (0, 0)),
                pl.BlockSpec((4, HIDDEN), lambda i: (0, 0)),
                pl.BlockSpec((HIDDEN, HIDDEN), lambda i: (0, 0)),
                pl.BlockSpec((HIDDEN, yn), lambda i: (0, 0)),
            ],
            out_specs=pl.BlockSpec((None, B, yn), lambda i: (i, 0, 0)),
        ),
        cost_estimate=pl.CostEstimate(flops=flops, transcendentals=0,
                                      bytes_accessed=bytes_accessed),
        compiler_params=pltpu.CompilerParams(
            # independent BN batches -> shard across TensorCores (v7x megacore)
            dimension_semantics=("parallel",)),
    )(z, w1, bn, w2, w3)
    return out[0] if squeeze else out


def netT_reference(z, w1, g1, b1, w2, g2, b2, w3):
    """Pure-JAX f32 reference (mirrors PyTorch _netT.forward, training-mode BN)."""
    h = z @ w1
    m = h.mean(0, keepdims=True)
    v = ((h - m) ** 2).mean(0, keepdims=True)
    h = jnp.maximum((h - m) / jnp.sqrt(v + BN_EPS) * g1 + b1, 0.0)
    h = h @ w2
    m = h.mean(0, keepdims=True)
    v = ((h - m) ** 2).mean(0, keepdims=True)
    h = jnp.maximum((h - m) / jnp.sqrt(v + BN_EPS) * g2 + b2, 0.0)
    return h @ w3


if __name__ == "__main__":
    # xn=16 input features, yn=16 output features, hidden=128 (fixed by the
    # module).  B=64 rows per BN batch, G=2 independent batches for the
    # gridded path.
    xn, yn, B, G = 16, 16, 64, 2

    key = jax.random.PRNGKey(0)
    kz, kz2, k1, k2, k3, kg1, kb1, kg2, kb2 = jax.random.split(key, 9)

    # PyTorch Linear stores weight as (out, in) and computes x @ W.T; here we
    # directly materialize the (in, out) matrices.
    w1 = jax.random.normal(k1, (xn, HIDDEN), dtype=jnp.float32) * 0.05
    w2 = jax.random.normal(k2, (HIDDEN, HIDDEN), dtype=jnp.float32) * 0.05
    w3 = jax.random.normal(k3, (HIDDEN, yn), dtype=jnp.float32) * 0.05
    g1 = 1.0 + 0.1 * jax.random.normal(kg1, (HIDDEN,), dtype=jnp.float32)
    b1 = 0.1 * jax.random.normal(kb1, (HIDDEN,), dtype=jnp.float32)
    g2 = 1.0 + 0.1 * jax.random.normal(kg2, (HIDDEN,), dtype=jnp.float32)
    b2 = 0.1 * jax.random.normal(kb2, (HIDDEN,), dtype=jnp.float32)

    params = prepare_params(w1, g1, b1, w2, g2, b2, w3)

    # ---- single BN batch (matches the PyTorch module call signature) -------
    z = jax.random.normal(kz, (B, xn), dtype=jnp.float32)
    out = jax.block_until_ready(netT_forward(z, params))
    ref = netT_reference(z, w1, g1, b1, w2, g2, b2, w3)
    assert out.shape == (B, yn)
    # bf16 matmul operands + one-pass variance -> loosened tolerance vs the
    # pure f32 reference.
    assert jnp.allclose(out, ref, atol=2e-2, rtol=2e-2), float(
        jnp.max(jnp.abs(out - ref)))

    # ---- multiple independent BN batches via the parallel grid axis --------
    zb = jax.random.normal(kz2, (G, B, xn), dtype=jnp.float32)
    outb = jax.block_until_ready(netT_forward(zb, params))
    refb = jax.vmap(
        lambda zz: netT_reference(zz, w1, g1, b1, w2, g2, b2, w3))(zb)
    assert outb.shape == (G, B, yn)
    assert jnp.allclose(outb, refb, atol=2e-2, rtol=2e-2), float(
        jnp.max(jnp.abs(outb - refb)))

    print("KERNEL_OK")
</pallas_src>

<mosaic_0001>
module attributes {stable_mosaic.version = 11 : i64} {
  func.func @_netT_kernel(%arg0: i32, %arg1: memref<1x64x16xf32, #tpu.memory_space<vmem>>, %arg2: memref<16x128xbf16, #tpu.memory_space<vmem>>, %arg3: memref<4x128xf32, #tpu.memory_space<vmem>>, %arg4: memref<128x128xbf16, #tpu.memory_space<vmem>>, %arg5: memref<128x16xbf16, #tpu.memory_space<vmem>>, %arg6: memref<1x64x16xf32, #tpu.memory_space<vmem>>) attributes {dimension_semantics = [#tpu.dimension_semantics<parallel>], iteration_bounds = array<i64: 1>, scalar_prefetch = 0 : i64, scratch_operands = 0 : i64, tpu.core_type = #tpu.core_type<tc>, window_params = [{transform_indices = @transform_0, window_bounds = array<i64: 1, 64, 16>}, {pipeline_mode = #tpu.pipeline_mode<synchronous>, transform_indices = @transform_1, window_bounds = array<i64: 16, 128>}, {pipeline_mode = #tpu.pipeline_mode<synchronous>, transform_indices = @transform_2, window_bounds = array<i64: 4, 128>}, {pipeline_mode = #tpu.pipeline_mode<synchronous>, transform_indices = @transform_3, window_bounds = array<i64: 128, 128>}, {pipeline_mode = #tpu.pipeline_mode<synchronous>, transform_indices = @transform_4, window_bounds = array<i64: 128, 16>}, {transform_indices = @transform_5, window_bounds = array<i64: 1, 64, 16>}]} {
    %c0 = arith.constant 0 : index
    %c0_0 = arith.constant 0 : index
    %0 = vector.load %arg3[%c0, %c0_0] : memref<4x128xf32, #tpu.memory_space<vmem>>, vector<1x128xf32>
    %c1 = arith.constant 1 : index
    %c0_1 = arith.constant 0 : index
    %1 = vector.load %arg3[%c1, %c0_1] : memref<4x128xf32, #tpu.memory_space<vmem>>, vector<1x128xf32>
    %c2 = arith.constant 2 : index
    %c0_2 = arith.constant 0 : index
    %2 = vector.load %arg3[%c2, %c0_2] : memref<4x128xf32, #tpu.memory_space<vmem>>, vector<1x128xf32>
    %c3 = arith.constant 3 : index
    %c0_3 = arith.constant 0 : index
    %3 = vector.load %arg3[%c3, %c0_3] : memref<4x128xf32, #tpu.memory_space<vmem>>, vector<1x128xf32>
    %c0_4 = arith.constant 0 : index
    %c0_5 = arith.constant 0 : index
    %c0_6 = arith.constant 0 : index
    %4 = vector.load %arg1[%c0_4, %c0_5, %c0_6] : memref<1x64x16xf32, #tpu.memory_space<vmem>>, vector<1x64x16xf32>
    %5 = vector.shape_cast %4 : vector<1x64x16xf32> to vector<64x16xf32>
    %6 = arith.truncf %5 : vector<64x16xf32> to vector<64x16xbf16>
    %c0_7 = arith.constant 0 : index
    %c0_8 = arith.constant 0 : index
    %7 = vector.load %arg2[%c0_7, %c0_8] : memref<16x128xbf16, #tpu.memory_space<vmem>>, vector<16x128xbf16>
    %cst = arith.constant dense<0.000000e+00> : vector<64x128xf32>
    %8 = tpu.matmul %6, %7, %cst {dimension_numbers = #tpu.dot_dimension_numbers<[1], [0], [0], [1], [0, 0, 1, 1], [], []>} : vector<64x16xbf16>, vector<16x128xbf16>, vector<64x128xf32> -> vector<64x128xf32>
    %cst_9 = arith.constant dense<0.000000e+00> : vector<128xf32>
    %9 = vector.multi_reduction <add>, %8, %cst_9 [0] : vector<64x128xf32> to vector<128xf32>
    %10 = vector.shape_cast %9 : vector<128xf32> to vector<1x128xf32>
    %cst_10 = arith.constant 1.562500e-02 : f32
    %11 = vector.broadcast %cst_10 : f32 to vector<1x128xf32>
    %12 = arith.mulf %10, %11 : vector<1x128xf32>
    %13 = arith.mulf %8, %8 : vector<64x128xf32>
    %cst_11 = arith.constant dense<0.000000e+00> : vector<128xf32>
    %14 = vector.multi_reduction <add>, %13, %cst_11 [0] : vector<64x128xf32> to vector<128xf32>
    %15 = vector.shape_cast %14 : vector<128xf32> to vector<1x128xf32>
    %cst_12 = arith.constant 1.562500e-02 : f32
    %16 = vector.broadcast %cst_12 : f32 to vector<1x128xf32>
    %17 = arith.mulf %15, %16 : vector<1x128xf32>
    %18 = arith.mulf %12, %12 : vector<1x128xf32>
    %19 = arith.subf %17, %18 : vector<1x128xf32>
    %cst_13 = arith.constant 0.000000e+00 : f32
    %20 = vector.broadcast %cst_13 : f32 to vector<1x128xf32>
    %21 = arith.maximumf %19, %20 : vector<1x128xf32>
    %cst_14 = arith.constant 9.99999974E-6 : f32
    %22 = vector.broadcast %cst_14 : f32 to vector<1x128xf32>
    %23 = arith.addf %21, %22 : vector<1x128xf32>
    %24 = math.rsqrt %23 : vector<1x128xf32>
    %25 = arith.mulf %0, %24 : vector<1x128xf32>
    %26 = arith.mulf %12, %25 : vector<1x128xf32>
    %27 = arith.subf %1, %26 : vector<1x128xf32>
    %28 = vector.broadcast %25 : vector<1x128xf32> to vector<64x128xf32>
    %29 = arith.mulf %8, %28 : vector<64x128xf32>
    %30 = vector.broadcast %27 : vector<1x128xf32> to vector<64x128xf32>
    %31 = arith.addf %29, %30 : vector<64x128xf32>
    %cst_15 = arith.constant 0.000000e+00 : f32
    %32 = vector.broadcast %cst_15 : f32 to vector<64x128xf32>
    %33 = arith.maximumf %31, %32 : vector<64x128xf32>
    %34 = arith.truncf %33 : vector<64x128xf32> to vector<64x128xbf16>
    %c0_16 = arith.constant 0 : index
    %c0_17 = arith.constant 0 : index
    %35 = vector.load %arg4[%c0_16, %c0_17] : memref<128x128xbf16, #tpu.memory_space<vmem>>, vector<128x128xbf16>
    %cst_18 = arith.constant dense<0.000000e+00> : vector<64x128xf32>
    %36 = tpu.matmul %34, %35, %cst_18 {dimension_numbers = #tpu.dot_dimension_numbers<[1], [0], [0], [1], [0, 0, 1, 1], [], []>} : vector<64x128xbf16>, vector<128x128xbf16>, vector<64x128xf32> -> vector<64x128xf32>
    %cst_19 = arith.constant dense<0.000000e+00> : vector<128xf32>
    %37 = vector.multi_reduction <add>, %36, %cst_19 [0] : vector<64x128xf32> to vector<128xf32>
    %38 = vector.shape_cast %37 : vector<128xf32> to vector<1x128xf32>
    %cst_20 = arith.constant 1.562500e-02 : f32
    %39 = vector.broadcast %cst_20 : f32 to vector<1x128xf32>
    %40 = arith.mulf %38, %39 : vector<1x128xf32>
    %41 = arith.mulf %36, %36 : vector<64x128xf32>
    %cst_21 = arith.constant dense<0.000000e+00> : vector<128xf32>
    %42 = vector.multi_reduction <add>, %41, %cst_21 [0] : vector<64x128xf32> to vector<128xf32>
    %43 = vector.shape_cast %42 : vector<128xf32> to vector<1x128xf32>
    %cst_22 = arith.constant 1.562500e-02 : f32
    %44 = vector.broadcast %cst_22 : f32 to vector<1x128xf32>
    %45 = arith.mulf %43, %44 : vector<1x128xf32>
    %46 = arith.mulf %40, %40 : vector<1x128xf32>
    %47 = arith.subf %45, %46 : vector<1x128xf32>
    %cst_23 = arith.constant 0.000000e+00 : f32
    %48 = vector.broadcast %cst_23 : f32 to vector<1x128xf32>
    %49 = arith.maximumf %47, %48 : vector<1x128xf32>
    %cst_24 = arith.constant 9.99999974E-6 : f32
    %50 = vector.broadcast %cst_24 : f32 to vector<1x128xf32>
    %51 = arith.addf %49, %50 : vector<1x128xf32>
    %52 = math.rsqrt %51 : vector<1x128xf32>
    %53 = arith.mulf %2, %52 : vector<1x128xf32>
    %54 = arith.mulf %40, %53 : vector<1x128xf32>
    %55 = arith.subf %3, %54 : vector<1x128xf32>
    %56 = vector.broadcast %53 : vector<1x128xf32> to vector<64x128xf32>
    %57 = arith.mulf %36, %56 : vector<64x128xf32>
    %58 = vector.broadcast %55 : vector<1x128xf32> to vector<64x128xf32>
    %59 = arith.addf %57, %58 : vector<64x128xf32>
    %cst_25 = arith.constant 0.000000e+00 : f32
    %60 = vector.broadcast %cst_25 : f32 to vector<64x128xf32>
    %61 = arith.maximumf %59, %60 : vector<64x128xf32>
    %62 = arith.truncf %61 : vector<64x128xf32> to vector<64x128xbf16>
    %c0_26 = arith.constant 0 : index
    %c0_27 = arith.constant 0 : index
    %63 = vector.load %arg5[%c0_26, %c0_27] : memref<128x16xbf16, #tpu.memory_space<vmem>>, vector<128x16xbf16>
    %cst_28 = arith.constant dense<0.000000e+00> : vector<64x16xf32>
    %64 = tpu.matmul %62, %63, %cst_28 {dimension_numbers = #tpu.dot_dimension_numbers<[1], [0], [0], [1], [0, 0, 1, 1], [], []>} : vector<64x128xbf16>, vector<128x16xbf16>, vector<64x16xf32> -> vector<64x16xf32>
    %c0_29 = arith.constant 0 : index
    %c0_30 = arith.constant 0 : index
    %c0_31 = arith.constant 0 : index
    %65 = vector.load %arg6[%c0_29, %c0_30, %c0_31] : memref<1x64x16xf32, #tpu.memory_space<vmem>>, vector<1x64x16xf32>
    %66 = vector.shape_cast %65 : vector<1x64x16xf32> to vector<64x16xf32>
    %67 = vector.shape_cast %64 : vector<64x16xf32> to vector<1x64x16xf32>
    tpu.vector_store %arg6[%c0_29, %c0_30, %c0_31], %67 {strides = array<i32>} : memref<1x64x16xf32, #tpu.memory_space<vmem>>, vector<1x64x16xf32>,
    return
  }
  func.func @transform_0(%arg0: i32) -> (i32, i32, i32) {
    %c0_i32 = arith.constant 0 : i32
    %c0_i32_0 = arith.constant 0 : i32
    %c0_i32_1 = arith.constant 0 : i32
    return %arg0, %c0_i32, %c0_i32_0 : i32, i32, i32
  }
  func.func @transform_1(%arg0: i32) -> (i32, i32) {
    %c0_i32 = arith.constant 0 : i32
    %c0_i32_0 = arith.constant 0 : i32
    %c0_i32_1 = arith.constant 0 : i32
    return %c0_i32, %c0_i32_0 : i32, i32
  }
  func.func @transform_2(%arg0: i32) -> (i32, i32) {
    %c0_i32 = arith.constant 0 : i32
    %c0_i32_0 = arith.constant 0 : i32
    %c0_i32_1 = arith.constant 0 : i32
    return %c0_i32, %c0_i32_0 : i32, i32
  }
  func.func @transform_3(%arg0: i32) -> (i32, i32) {
    %c0_i32 = arith.constant 0 : i32
    %c0_i32_0 = arith.constant 0 : i32
    %c0_i32_1 = arith.constant 0 : i32
    return %c0_i32, %c0_i32_0 : i32, i32
  }
  func.func @transform_4(%arg0: i32) -> (i32, i32) {
    %c0_i32 = arith.constant 0 : i32
    %c0_i32_0 = arith.constant 0 : i32
    %c0_i32_1 = arith.constant 0 : i32
    return %c0_i32, %c0_i32_0 : i32, i32
  }
  func.func @transform_5(%arg0: i32) -> (i32, i32, i32) {
    %c0_i32 = arith.constant 0 : i32
    %c0_i32_0 = arith.constant 0 : i32
    %c0_i32_1 = arith.constant 0 : i32
    return %arg0, %c0_i32, %c0_i32_0 : i32, i32, i32
  }
}

</mosaic_0001>

<bundles_post_ra>
// kernel: tpu_custom_call.1
= control target key start
LH: loop header
LB: loop body
LE: loop exit
PB: predicated region body
PF: predicated region fallthrough
CT: control target
= control target key end

     0   :  { %vm45_vm0 = vcmask 130048   ;;  %s847_s1 = inlined_call_operand.vmem [shape: bf16[16,128], index: 1, kind: input, shape index: {}]   ;;  %s848_s0 = inlined_call_operand.vmem [shape: f32[1,64,16], index: 0, kind: input, shape index: {}]   ;;  %s849_s3 = inlined_call_operand.vmem [shape: bf16[128,128], index: 3, kind: input, shape index: {}]   ;;  %s850_s2 = inlined_call_operand.vmem [shape: f32[4,128], index: 2, kind: input, shape index: {}]   ;;  %s851_s4 = inlined_call_operand.vmem [shape: bf16[128,16], index: 4, kind: input, shape index: {}]   ;;  %s852_s5 = inlined_call_operand.vmem [shape: f32[1,64,16], index: 5, kind: output, shape index: {}]  }
   0x1   :  { %v661_v0 = vld [vmem:[%s847_s1] sm:$0xff]   ;;  %v26_v2 = vld [vmem:[%s848_s0 + $0x8] sm:$0xff]  ;;  %v27_v3 = vld [vmem:[%s848_s0 + $0x10] sm:$0xff] }
   0x2   :  { %v25_v1 = vld [vmem:[%s848_s0] sm:$0xff]  ;;  %603 = vmatprep.subr.bf16.mxu0 %v661_v0  ;;  %v28_v5 = vld [vmem:[%s848_s0 + $0x18] sm:$0xff]  ;;  %v30_v7 = vld [vmem:[%s848_s0 + $0x28] sm:$0xff] }
   0x3   :  { %v33_v4 = vpack.c.bf16 %v26_v2, %v25_v1  ;;  %v29_v6 = vld [vmem:[%s848_s0 + $0x20] sm:$0xff]  ;;  %604 = vmatpush3.bf16.msra.mxu0 %v661_v0  ;;  %v34_v8 = vpack.c.bf16 %v28_v5, %v27_v3  ;;  %v31_v10 = vld [vmem:[%s848_s0 + $0x30] sm:$0xff]  ;;  %v32_v11 = vld [vmem:[%s848_s0 + $0x38] sm:$0xff]  ;;  %v167_v5 = vlaneseq }
   0x4   :  { %v35_v9 = vpack.c.bf16 %v30_v7, %v29_v6  ;;  %v36_v12 = vpack.c.bf16 %v32_v11, %v31_v10  ;;  %v662_v13 = vld [vmem:[%s849_s3] sm:$0xff]   ;;  %v663_v14 = vld [vmem:[%s849_s3 + $0x8] sm:$0xff]   ;;  %v664_v15 = vld [vmem:[%s849_s3 + $0x10] sm:$0xff]  }
   0x5   :  { %605 = vmatprep.mubr.msk.bf16.mxu0 %vm45_vm0, %v33_v4  ;;  %613 = vmatprep.subr.bf16.mxu1 %v662_v13  ;;  %v665_v16 = vld [vmem:[%s849_s3 + $0x18] sm:$0xff]   ;;  %v666_v17 = vld [vmem:[%s849_s3 + $0x20] sm:$0xff]   ;;  %v667_v18 = vld [vmem:[%s849_s3 + $0x28] sm:$0xff]   ;;  %v168_v6 = vshrl.u32 %v167_v5, 7 }
   0x6   :  { %606 = vmatmul.mubr.msk.bf16.vlgmr.msra.gmra.mrb[0].mxu0 %vm45_vm0, %v34_v8  ;;  %614 = vmatpush3.bf16.msra.mxu1 %v662_v13  ;;  %v668_v19 = vld [vmem:[%s849_s3 + $0x30] sm:$0xff]   ;;  %v669_v20 = vld [vmem:[%s849_s3 + $0x38] sm:$0xff]   ;;  %v21_v7 = vld [vmem:[%s850_s2] sm:$0x1] }
   0x7   :  { %609 = vmatprep.mubr.msk.bf16.mxu0 %vm45_vm0, %v35_v9  ;;  %615 = vmatprep.subr.bf16.mxu1 %v663_v14  ;;  %v775_v8 = vsub.s32 0, %v168_v6  ;;  %v22_v11 = vld [vmem:[%s850_s2 + $0x1] sm:$0x1] }
   0xa   :  { %616 = vmatpush3.bf16.msra.mxu1 %v663_v14 }
   0xb   :  { %617 = vmatprep.subr.bf16.mxu1 %v664_v15 }
   0xe   :  { %610 = vmatmul.mubr.msk.bf16.gmra.mrb[4].mxu0 %vm45_vm0, %v36_v12  ;;  %618 = vmatpush3.bf16.msra.mxu1 %v664_v15 }
   0xf   :  { %619 = vmatprep.subr.bf16.mxu1 %v665_v16 }
  0x12   :  { %620 = vmatpush3.bf16.msra.mxu1 %v665_v16 }
  0x13   :  { %621 = vmatprep.subr.bf16.mxu1 %v666_v17 }
  0x16   :  { %622 = vmatpush3.bf16.msra.mxu1 %v666_v17 }
  0x17   :  { %623 = vmatprep.subr.bf16.mxu1 %v667_v18 }
  0x1a   :  { %624 = vmatpush3.bf16.msra.mxu1 %v667_v18 }
  0x1b   :  { %625 = vmatprep.subr.bf16.mxu1 %v668_v19 }
  0x1e   :  { %626 = vmatpush3.bf16.msra.mxu1 %v668_v19 }
  0x1f   :  { %627 = vmatprep.subr.bf16.mxu1 %v669_v20 }
  0x22   :  { %628 = vmatpush3.bf16.msra.mxu1 %v669_v20 }
  0xd9   :  { %v767_v21 = vpop.f32.mrb[0].mxu0 }
  0xda   :  { %v92_v22 = vpop.f32.mrb[1].mxu0  ;;  %v139_v28 = vmul.f32 %v767_v21, %v767_v21 }
  0xdb   :  { %v608_v23 = vpop.f32.mrb[2].mxu0  ;;  %v137_v25 = vmul.f32 %v92_v22, %v92_v22 }
  0xdc   :  { %v95_v24 = vpop.f32.mrb[3].mxu0  ;;  %v140_v31 = vmul.f32 %v608_v23, %v608_v23 }
  0xdd   :  { %v123_v26 = vadd.f32 %v95_v24, %v92_v22  ;;  %v138_v27 = vmul.f32 %v95_v24, %v95_v24 }
  0xdf   :  { %v124_v29 = vadd.f32 %v767_v21, %v123_v26  ;;  %v145_v30 = vadd.f32 %v138_v27, %v137_v25 }
  0xe1   :  { %v146_v32 = vadd.f32 %v145_v30, %v139_v28  ;;  %v611_v33 = vpop.f32.mrb[4].mxu0  ;;  %v125_v34 = vadd.f32 %v608_v23, %v124_v29 }
  0xe2   :  { %v108_v35 = vpop.f32.mrb[5].mxu0  ;;  %v143_v44 = vmul.f32 %v611_v33, %v611_v33 }
  0xe3   :  { %v126_v36 = vadd.f32 %v125_v34, %v108_v35  ;;  %v141_v37 = vmul.f32 %v108_v35, %v108_v35  ;;  %v147_v38 = vadd.f32 %v146_v32, %v140_v31  ;;  %v612_v39 = vpop.f32.mrb[6].mxu0 }
  0xe4   :  { %v111_v40 = vpop.f32.mrb[7].mxu0  ;;  %v144_v47 = vmul.f32 %v612_v39, %v612_v39 }
  0xe5   :  { %v148_v41 = vadd.f32 %v147_v38, %v141_v37  ;;  %v127_v42 = vadd.f32 %v126_v36, %v111_v40  ;;  %v142_v43 = vmul.f32 %v111_v40, %v111_v40 }
  0xe7   :  { %v128_v45 = vadd.f32 %v611_v33, %v127_v42  ;;  %v149_v46 = vadd.f32 %v148_v41, %v142_v43 }
  0xe9   :  { %v129_v48 = vadd.f32 %v612_v39, %v128_v45  ;;  %v150_v49 = vadd.f32 %v149_v46, %v143_v44  ;;  %v670_v44 = vld [vmem:[%s851_s4] sm:$0xff]   ;;  %v671_v45 = vld [vmem:[%s851_s4 + $0x8] sm:$0xff]   ;;  %v672_v46 = vld [vmem:[%s851_s4 + $0x10] sm:$0xff]  }
  0xea   :  { %637 = vmatprep.subr.bf16.mxu0 %v670_v44 }
  0xeb   :  { %v130_v50 = vrot.slane %v129_v48, 4  ;;  %v151_v51 = vadd.f32 %v150_v49, %v144_v47  ;;  %638 = vmatpush3.bf16.msra.mxu0 %v670_v44  ;;  %v673_v47 = vld [vmem:[%s851_s4 + $0x18] sm:$0xff]   ;;  %v675_v49 = vld [vmem:[%s851_s4 + $0x28] sm:$0xff]  }
  0xec   :  { %639 = vmatprep.subr.bf16.mxu0 %v671_v45 }
  0xed   :  { %v131_v52 = vadd.f32 %v130_v50, %v129_v48  ;;  %v152_v53 = vrot.slane %v151_v51, 4  ;;  %v674_v48 = vld [vmem:[%s851_s4 + $0x20] sm:$0xff]   ;;  %v676_v50 = vld [vmem:[%s851_s4 + $0x30] sm:$0xff]  }
  0xef   :  { %v132_v54 = vrot.slane %v131_v52, 2  ;;  %v153_v55 = vadd.f32 %v152_v53, %v151_v51  ;;  %640 = vmatpush3.bf16.msra.mxu0 %v671_v45  ;;  %v677_v51 = vld [vmem:[%s851_s4 + $0x38] sm:$0xff]  }
  0xf0   :  { %641 = vmatprep.subr.bf16.mxu0 %v672_v46 }
  0xf1   :  { %v133_v56 = vadd.f32 %v132_v54, %v131_v52  ;;  %v154_v57 = vrot.slane %v153_v55, 2 }
  0xf3   :  { %v134_v58 = vrot.slane %v133_v56, 1  ;;  %v155_v59 = vadd.f32 %v154_v57, %v153_v55  ;;  %642 = vmatpush3.bf16.msra.mxu0 %v672_v46 }
  0xf4   :  { %643 = vmatprep.subr.bf16.mxu0 %v673_v47 }
  0xf5   :  { %v135_v60 = vadd.f32 %v134_v58, %v133_v56  ;;  %v156_v61 = vrot.slane %v155_v59, 1 }
  0xf7   :  { %v136_v62 = vmul.f32 0.015625, %v135_v60  ;;  %v157_v63 = vadd.f32 %v156_v61, %v155_v59  ;;  %644 = vmatpush3.bf16.msra.mxu0 %v673_v47 }
  0xf8   :  { %645 = vmatprep.subr.bf16.mxu0 %v674_v48 }
  0xf9   :  { %v158_v0 = vmul.f32 0.015625, %v157_v63  ;;  %v159_v1 = vmul.f32 %v136_v62, %v136_v62 }
  0xfb   :  { %v160_v2 = vsub.f32 %v158_v0, %v159_v1  ;;  %646 = vmatpush3.bf16.msra.mxu0 %v674_v48 }
  0xfc   :  { %647 = vmatprep.subr.bf16.mxu0 %v675_v49 }
  0xfd   :  { %v161_v3 = vmax.f32 %v160_v2, 0.0 }
  0xff   :  { %v162_v4 = vadd.f32 1e-05, %v161_v3  ;;  %648 = vmatpush3.bf16.msra.mxu0 %v675_v49 }
 0x100   :  { %649 = vmatprep.subr.bf16.mxu0 %v676_v50 }
 0x101   :  { %678 = vrsqrt.f32 %v162_v4 }
 0x103   :  { %650 = vmatpush3.bf16.msra.mxu0 %v676_v50 }
 0x104   :  { %651 = vmatprep.subr.bf16.mxu0 %v677_v51 }
 0x107   :  { %652 = vmatpush3.bf16.msra.mxu0 %v677_v51 }
 0x10b   :  { %v679_v9 = vpop.eup %678 }
 0x10c   :  { %v164_v10 = vmul.f32 %v679_v9, %v21_v7 }
 0x10e   :  { %v165_v12 = vmul.f32 %v164_v10, %v136_v62  ;;  %v170_v13 = vrot.slane %v164_v10, %v775_v8 }
 0x110   :  { %v166_v14 = vsub.f32 %v22_v11, %v165_v12  ;;  %v176_v15 = vmul.f32 %v170_v13, %v111_v40  ;;  %v171_v16 = vmul.f32 %v170_v13, %v92_v22  ;;  %v172_v17 = vmul.f32 %v170_v13, %v95_v24 }
 0x111   :  { %v173_v18 = vmul.f32 %v767_v21, %v170_v13  ;;  %v174_v19 = vmul.f32 %v608_v23, %v170_v13  ;;  %v175_v20 = vmul.f32 %v170_v13, %v108_v35  ;;  %v177_v25 = vmul.f32 %v611_v33, %v170_v13 }
 0x112   :  { %v182_v26 = vrot.slane %v166_v14, %v775_v8  ;;  %v178_v27 = vmul.f32 %v612_v39, %v170_v13 }
 0x114   :  { %v188_v28 = vadd.f32 %v182_v26, %v176_v15  ;;  %v183_v29 = vadd.f32 %v182_v26, %v171_v16  ;;  %v184_v30 = vadd.f32 %v182_v26, %v172_v17  ;;  %v185_v31 = vadd.f32 %v182_v26, %v173_v18 }
 0x115   :  { %v186_v32 = vadd.f32 %v182_v26, %v174_v19  ;;  %v187_v34 = vadd.f32 %v182_v26, %v175_v20  ;;  %v189_v36 = vadd.f32 %v182_v26, %v177_v25  ;;  %v190_v37 = vadd.f32 %v182_v26, %v178_v27 }
 0x116   :  { %v191_v38 = vmax.f32 %v183_v29, 0.0  ;;  %v192_v40 = vmax.f32 %v184_v30, 0.0  ;;  %v193_v22 = vmax.f32 %v185_v31, 0.0  ;;  %v196_v24 = vmax.f32 %v188_v28, 0.0 }
 0x117   :  { %v194_v41 = vmax.f32 %v186_v32, 0.0  ;;  %v195_v21 = vmax.f32 %v187_v34, 0.0  ;;  %v197_v23 = vmax.f32 %v189_v36, 0.0  ;;  %v198_v35 = vmax.f32 %v190_v37, 0.0 }
 0x118   :  { %v199_v33 = vpack.c.bf16 %v192_v40, %v191_v38 }
 0x119   :  { %v200_v42 = vpack.c.bf16 %v194_v41, %v193_v22  ;;  %v201_v43 = vpack.c.bf16 %v196_v24, %v195_v21  ;;  %v202_v39 = vpack.c.bf16 %v198_v35, %v197_v23  ;;  %v23_v21 = vld [vmem:[%s850_s2 + $0x2] sm:$0x1] }
 0x11a   :  { %629 = vmatprep.mubr.bf16.mxu1 %v199_v33  ;;  %v24_v33 = vld [vmem:[%s850_s2 + $0x3] sm:$0x1] }
 0x11b   :  { %630 = vmatmul.mubr.bf16.vlgmr.msra.gmra.mrb[0].mxu1 %v200_v42 }
 0x11c   :  { %633 = vmatprep.mubr.bf16.mxu1 %v201_v43 }
 0x123   :  { %634 = vmatmul.mubr.bf16.gmra.mrb[4].mxu1 %v202_v39 }
 0x1ee   :  { %v631_v52 = vpop.f32.mrb[0].mxu1 }
 0x1ef   :  { %v301_v53 = vpop.f32.mrb[1].mxu1  ;;  %v348_v59 = vmul.f32 %v631_v52, %v631_v52 }
 0x1f0   :  { %v632_v54 = vpop.f32.mrb[2].mxu1  ;;  %v346_v56 = vmul.f32 %v301_v53, %v301_v53 }
 0x1f1   :  { %v304_v55 = vpop.f32.mrb[3].mxu1  ;;  %v349_v62 = vmul.f32 %v632_v54, %v632_v54 }
 0x1f2   :  { %v332_v57 = vadd.f32 %v304_v55, %v301_v53  ;;  %v347_v58 = vmul.f32 %v304_v55, %v304_v55 }
 0x1f4   :  { %v333_v60 = vadd.f32 %v631_v52, %v332_v57  ;;  %v354_v61 = vadd.f32 %v347_v58, %v346_v56 }
 0x1f6   :  { %v355_v63 = vadd.f32 %v354_v61, %v348_v59  ;;  %v635_v0 = vpop.f32.mrb[4].mxu1  ;;  %v334_v1 = vadd.f32 %v632_v54, %v333_v60 }
 0x1f7   :  { %v317_v2 = vpop.f32.mrb[5].mxu1  ;;  %v352_v12 = vmul.f32 %v635_v0, %v635_v0 }
 0x1f8   :  { %v335_v3 = vadd.f32 %v334_v1, %v317_v2  ;;  %v350_v4 = vmul.f32 %v317_v2, %v317_v2  ;;  %v356_v5 = vadd.f32 %v355_v63, %v349_v62  ;;  %v636_v6 = vpop.f32.mrb[6].mxu1 }
 0x1f9   :  { %v320_v7 = vpop.f32.mrb[7].mxu1  ;;  %v353_v15 = vmul.f32 %v636_v6, %v636_v6 }
 0x1fa   :  { %v357_v9 = vadd.f32 %v356_v5, %v350_v4  ;;  %v336_v10 = vadd.f32 %v335_v3, %v320_v7  ;;  %v351_v11 = vmul.f32 %v320_v7, %v320_v7 }
 0x1fc   :  { %v337_v13 = vadd.f32 %v635_v0, %v336_v10  ;;  %v358_v14 = vadd.f32 %v357_v9, %v351_v11 }
 0x1fe   :  { %v338_v16 = vadd.f32 %v636_v6, %v337_v13  ;;  %v359_v17 = vadd.f32 %v358_v14, %v352_v12 }
 0x200   :  { %v339_v18 = vrot.slane %v338_v16, 4  ;;  %v360_v19 = vadd.f32 %v359_v17, %v353_v15 }
 0x202   :  { %v340_v20 = vadd.f32 %v339_v18, %v338_v16  ;;  %v361_v25 = vrot.slane %v360_v19, 4 }
 0x204   :  { %v341_v26 = vrot.slane %v340_v20, 2  ;;  %v362_v27 = vadd.f32 %v361_v25, %v360_v19 }
 0x206   :  { %v342_v28 = vadd.f32 %v341_v26, %v340_v20  ;;  %v363_v29 = vrot.slane %v362_v27, 2 }
 0x208   :  { %v343_v30 = vrot.slane %v342_v28, 1  ;;  %v364_v31 = vadd.f32 %v363_v29, %v362_v27 }
 0x20a   :  { %v344_v32 = vadd.f32 %v343_v30, %v342_v28  ;;  %v365_v34 = vrot.slane %v364_v31, 1 }
 0x20c   :  { %v345_v36 = vmul.f32 0.015625, %v344_v32  ;;  %v366_v37 = vadd.f32 %v365_v34, %v364_v31 }
 0x20e   :  { %v367_v38 = vmul.f32 0.015625, %v366_v37  ;;  %v368_v40 = vmul.f32 %v345_v36, %v345_v36 }
 0x210   :  { %v369_v22 = vsub.f32 %v367_v38, %v368_v40 }
 0x212   :  { %v370_v24 = vmax.f32 %v369_v22, 0.0 }
 0x214   :  { %v371_v41 = vadd.f32 1e-05, %v370_v24 }
 0x216   :  { %680 = vrsqrt.f32 %v371_v41 }
 0x220   :  { %v681_v23 = vpop.eup %680 }
 0x221   :  { %v373_v35 = vmul.f32 %v681_v23, %v23_v21 }
 0x223   :  { %v374_v42 = vmul.f32 %v373_v35, %v345_v36  ;;  %v379_v43 = vrot.slane %v373_v35, %v775_v8 }
 0x225   :  { %v375_v39 = vsub.f32 %v24_v33, %v374_v42  ;;  %v385_v44 = vmul.f32 %v379_v43, %v320_v7  ;;  %v380_v45 = vmul.f32 %v379_v43, %v301_v53  ;;  %v381_v46 = vmul.f32 %v379_v43, %v304_v55 }
 0x226   :  { %v382_v47 = vmul.f32 %v631_v52, %v379_v43  ;;  %v383_v48 = vmul.f32 %v632_v54, %v379_v43  ;;  %v384_v49 = vmul.f32 %v379_v43, %v317_v2  ;;  %v386_v50 = vmul.f32 %v635_v0, %v379_v43 }
 0x227   :  { %v391_v51 = vrot.slane %v375_v39, %v775_v8  ;;  %v387_v56 = vmul.f32 %v636_v6, %v379_v43 }
 0x229   :  { %v397_v57 = vadd.f32 %v391_v51, %v385_v44  ;;  %v392_v58 = vadd.f32 %v391_v51, %v380_v45  ;;  %v393_v59 = vadd.f32 %v391_v51, %v381_v46  ;;  %v394_v60 = vadd.f32 %v391_v51, %v382_v47 }
 0x22a   :  { %v395_v61 = vadd.f32 %v391_v51, %v383_v48  ;;  %v396_v62 = vadd.f32 %v391_v51, %v384_v49  ;;  %v398_v63 = vadd.f32 %v391_v51, %v386_v50  ;;  %v399_v1 = vadd.f32 %v391_v51, %v387_v56 }
 0x22b   :  { %v405_v3 = vmax.f32 %v397_v57, 0.0  ;;  %v400_v4 = vmax.f32 %v392_v58, 0.0  ;;  %v401_v5 = vmax.f32 %v393_v59, 0.0  ;;  %v402_v53 = vmax.f32 %v394_v60, 0.0 }
 0x22c   :  { %v403_v55 = vmax.f32 %v395_v61, 0.0  ;;  %v404_v52 = vmax.f32 %v396_v62, 0.0  ;;  %v406_v54 = vmax.f32 %v398_v63, 0.0  ;;  %v407_v2 = vmax.f32 %v399_v1, 0.0 }
 0x22d   :  { %v408_v0 = vpack.c.bf16 %v401_v5, %v400_v4 }
 0x22e   :  { %v409_v7 = vpack.c.bf16 %v403_v55, %v402_v53  ;;  %v410_v8 = vpack.c.bf16 %v405_v3, %v404_v52  ;;  %v411_v6 = vpack.c.bf16 %v407_v2, %v406_v54 }
 0x22f   :  { %653 = vmatprep.mubr.bf16.mxu0 %v408_v0 }
 0x230   :  { %654 = vmatmul.mubr.bf16.vlgmr.msra.gmra.mrb[8].mxu0 %v409_v7 }
 0x231   :  { %657 = vmatprep.mubr.bf16.mxu0 %v410_v8 }
 0x238   :  { %658 = vmatmul.mubr.bf16.gmra.mrb[12].mxu0 %v411_v6 }
 0x303   :  { %v655_v9 = vpop.f32.mrb[8].mxu0 }
 0x304   :  { %543 = vst.msk [vmem:[%s852_s5 + $0x10] sm:$0xff] %vm45_vm0, %v655_v9  ;;  %v510_v10 = vpop.f32.mrb[9].mxu0 }
 0x305   :  { %541 = vst.msk [vmem:[%s852_s5] sm:$0xff] %vm45_vm0, %v510_v10  ;;  %v656_v11 = vpop.f32.mrb[10].mxu0 }
 0x306   :  { %544 = vst.msk [vmem:[%s852_s5 + $0x18] sm:$0xff] %vm45_vm0, %v656_v11  ;;  %v513_v12 = vpop.f32.mrb[11].mxu0 }
 0x307   :  { %542 = vst.msk [vmem:[%s852_s5 + $0x8] sm:$0xff] %vm45_vm0, %v513_v12 }
 0x30b   :  { %v659_v13 = vpop.f32.mrb[12].mxu0 }
 0x30c   :  { %547 = vst.msk [vmem:[%s852_s5 + $0x30] sm:$0xff] %vm45_vm0, %v659_v13  ;;  %v526_v14 = vpop.f32.mrb[13].mxu0 }
 0x30d   :  { %545 = vst.msk [vmem:[%s852_s5 + $0x20] sm:$0xff] %vm45_vm0, %v526_v14  ;;  %v660_v15 = vpop.f32.mrb[14].mxu0 }
 0x30e   :  { %548 = vst.msk [vmem:[%s852_s5 + $0x38] sm:$0xff] %vm45_vm0, %v660_v15  ;;  %v529_v16 = vpop.f32.mrb[15].mxu0 }
 0x30f   :  { %546 = vst.msk [vmem:[%s852_s5 + $0x28] sm:$0xff] %vm45_vm0, %v529_v16 }

</bundles_post_ra>
